<compile_context>
chip_gen: v5e
topology: v5e:2x2
jax: 0.10.0
libtpu: 0.0.40
codegen_flags: <defaults>
</compile_context>

<pallas_src>
import jax
import jax.numpy as jnp
from jax.experimental import pallas as pl
from jax.experimental.pallas import tpu as pltpu

NUM_CLASSES = 10
EMB_DIM = 10
_LANE = 128


# --------------------------------------------------------------------------
# Kernel A: plain label-embedding gather (the base-class-defined compute).
# Output is (tileB, 10): unavoidably lane-sparse, so callers that feed the
# result into a Linear should prefer the fused kernel B below.
# --------------------------------------------------------------------------
def _embed_kernel(labels_ref, table_ref, out_ref):
    labels = labels_ref[...]                       # (tileB, 1) int32
    table = table_ref[...]                         # (10, 10)   f32
    tile_b = labels.shape[0]

    # Exact VPU select-accumulate over the 10 rows (bit-exact row copy).
    emb = jnp.zeros((tile_b, EMB_DIM), dtype=jnp.float32)
    for k in range(NUM_CLASSES):
        emb = jnp.where(labels == k, table[k:k + 1, :], emb)
    out_ref[...] = emb


# --------------------------------------------------------------------------
# Kernel B (recommended): embedding folded into the subclass's first Linear.
#   out = fused_table[labels] + z @ W_z + bias
# fused_table = label_emb @ W_emb is precomputed offline in the wrapper, so
# the kernel does a tiny 10-way gather (VALU filler) plus one MXU matmul with
# a lane-dense (H % 128 == 0) output.  No [emb | z] concat is materialized.
# --------------------------------------------------------------------------
def _fused_embed_linear_kernel(labels_ref, z_ref, ftab_ref, w_ref, b_ref, out_ref):
    labels = labels_ref[...]                       # (tileB, 1)  int32
    z = z_ref[...]                                 # (tileB, L)  f32
    ftab = ftab_ref[...]                           # (10, H)     f32
    tile_b = labels.shape[0]
    hidden = ftab.shape[1]

    # Bit-exact gather of the folded embedding rows (VPU select-accumulate;
    # free filler next to the MXU matmul below).
    emb_h = jnp.zeros((tile_b, hidden), dtype=jnp.float32)
    for k in range(NUM_CLASSES):
        emb_h = jnp.where(labels == k, ftab[k:k + 1, :], emb_h)

    zw = jnp.dot(z, w_ref[...], preferred_element_type=jnp.float32)
    out_ref[...] = emb_h + zw + b_ref[...]         # single lane-dense store


# --------------------------------------------------------------------------
# Wrapper helpers
# --------------------------------------------------------------------------
def _pad_lanes(n: int) -> int:
    return ((n + _LANE - 1) // _LANE) * _LANE


def _gridded_params(block_b: int, lane_widths) -> pltpu.CompilerParams:
    """Compiler params for the gridded path.

    vmem_limit_bytes is set explicitly (v5e's scoped default is 16 MiB) from
    the lane-padded, double-buffered per-step tile footprint, with headroom,
    capped below v7x's 64 MiB physical VMEM.
    """
    per_step = 4 * block_b * sum(_pad_lanes(w) for w in lane_widths)
    vmem = min(max(2 * per_step + (4 << 20), 16 << 20), 48 << 20)
    # TODO(synk): on v7x, once the fused matmul dominates, switch this grid
    # axis to pltpu.CORE_PARALLEL (and verify with a bundle dump) so both
    # TensorCores get work; plain "parallel" barely changes codegen.
    return pltpu.CompilerParams(
        dimension_semantics=("parallel",),
        vmem_limit_bytes=int(vmem),
    )


def embed_labels(labels: jax.Array, table: jax.Array, *, block_b: int = 8192) -> jax.Array:
    """Pallas equivalent of nn.Embedding(10, 10)(labels) -> (B, 10) f32."""
    b = labels.shape[0]
    labels2d = labels.reshape(b, 1).astype(jnp.int32)
    table = table.astype(jnp.float32)
    out_shape = jax.ShapeDtypeStruct((b, EMB_DIM), jnp.float32)

    if b <= block_b:
        # Gridless: one invocation, no per-step grid overhead.
        return pl.pallas_call(
            _embed_kernel,
            out_shape=out_shape,
            in_specs=[
                pl.BlockSpec((b, 1), lambda: (0, 0)),
                pl.BlockSpec((NUM_CLASSES, EMB_DIM), lambda: (0, 0)),
            ],
            out_specs=pl.BlockSpec((b, EMB_DIM), lambda: (0, 0)),
        )(labels2d, table)

    grid = (pl.cdiv(b, block_b),)
    return pl.pallas_call(
        _embed_kernel,
        out_shape=out_shape,
        grid_spec=pltpu.PrefetchScalarGridSpec(
            num_scalar_prefetch=0,
            grid=grid,
            in_specs=[
                pl.BlockSpec((block_b, 1), lambda i: (i, 0)),
                pl.BlockSpec((NUM_CLASSES, EMB_DIM), lambda i: (0, 0)),
            ],
            out_specs=pl.BlockSpec((block_b, EMB_DIM), lambda i: (i, 0)),
        ),
        compiler_params=_gridded_params(block_b, (1, EMB_DIM)),
    )(labels2d, table)


def fused_embed_first_linear(labels: jax.Array, z: jax.Array, fused_table: jax.Array,
                             w_z: jax.Array, bias: jax.Array, *,
                             block_b: int = 8192) -> jax.Array:
    """out = fused_table[labels] + z @ w_z + bias   (lane-dense, MXU-backed).

    fused_table must be label_emb @ W_emb with hidden width a multiple of 128
    (precomputed offline); this is algebraically identical to
    concat([emb(labels), z], -1) @ concat([W_emb, W_z], 0) + bias without ever
    materializing the concat.
    """
    b = labels.shape[0]
    latent = z.shape[-1]
    hidden = fused_table.shape[-1]
    assert hidden % _LANE == 0, "hidden width must be a multiple of 128 (lane-dense output)"

    labels2d = labels.reshape(b, 1).astype(jnp.int32)
    z = z.astype(jnp.float32)
    fused_table = fused_table.astype(jnp.float32)
    w_z = w_z.astype(jnp.float32)
    bias = bias.reshape(1, hidden).astype(jnp.float32)
    out_shape = jax.ShapeDtypeStruct((b, hidden), jnp.float32)

    if b <= block_b:
        return pl.pallas_call(
            _fused_embed_linear_kernel,
            out_shape=out_shape,
            in_specs=[
                pl.BlockSpec((b, 1), lambda: (0, 0)),
                pl.BlockSpec((b, latent), lambda: (0, 0)),
                pl.BlockSpec((NUM_CLASSES, hidden), lambda: (0, 0)),
                pl.BlockSpec((latent, hidden), lambda: (0, 0)),
                pl.BlockSpec((1, hidden), lambda: (0, 0)),
            ],
            out_specs=pl.BlockSpec((b, hidden), lambda: (0, 0)),
        )(labels2d, z, fused_table, w_z, bias)

    grid = (pl.cdiv(b, block_b),)
    return pl.pallas_call(
        _fused_embed_linear_kernel,
        out_shape=out_shape,
        grid_spec=pltpu.PrefetchScalarGridSpec(
            num_scalar_prefetch=0,
            grid=grid,
            in_specs=[
                pl.BlockSpec((block_b, 1), lambda i: (i, 0)),
                pl.BlockSpec((block_b, latent), lambda i: (i, 0)),
                pl.BlockSpec((NUM_CLASSES, hidden), lambda i: (0, 0)),
                pl.BlockSpec((latent, hidden), lambda i: (0, 0)),
                pl.BlockSpec((1, hidden), lambda i: (0, 0)),
            ],
            out_specs=pl.BlockSpec((block_b, hidden), lambda i: (i, 0)),
        ),
        compiler_params=_gridded_params(block_b, (1, latent, hidden)),
    )(labels2d, z, fused_table, w_z, bias)


# --------------------------------------------------------------------------
# Module ports
# --------------------------------------------------------------------------
class BaseGenerator:
    """JAX/Pallas port of the (abstract) PyTorch BaseGenerator.

    Holds `img_size` and the nn.Embedding(10, 10) table; forward() is abstract
    in the reference module.
    """

    def __init__(self, img_size: int, key: jax.Array) -> None:
        self.img_size = img_size
        # nn.Embedding default init: weight ~ N(0, 1), shape (10, 10).
        self.label_emb = jax.random.normal(key, (NUM_CLASSES, EMB_DIM), dtype=jnp.float32)

    def embed_labels(self, labels: jax.Array) -> jax.Array:
        """The base-class-defined compute: label_emb(labels) -> (B, 10)."""
        return embed_labels(labels, self.label_emb)

    def forward(self, z: jax.Array, labels: jax.Array) -> jax.Array:
        # TODO(synk): forward() is abstract in the reference module
        # (raise NotImplementedError); concrete subclasses should fuse the
        # embedding into their first Linear via fused_embed_first_linear.
        raise NotImplementedError


class DemoCGANGenerator(BaseGenerator):
    """Minimal concrete subclass hosting the fused Pallas kernel.

    Implements the conventional cGAN input layer Linear(10 + latent -> hidden)
    with the label-embedding branch pre-folded offline into a (10, hidden)
    table, so the kernel never materializes the [emb | z] concat and its
    output is lane-dense (hidden % 128 == 0).
    """

    def __init__(self, img_size: int, latent_dim: int, hidden: int, key: jax.Array) -> None:
        k_emb, k_top, k_bot, k_bias = jax.random.split(key, 4)
        super().__init__(img_size, k_emb)
        self.latent_dim = latent_dim
        self.hidden = hidden
        scale = 1.0 / jnp.sqrt(jnp.float32(EMB_DIM + latent_dim))
        self.w_emb = scale * jax.random.normal(k_top, (EMB_DIM, hidden), dtype=jnp.float32)
        self.w_z = scale * jax.random.normal(k_bot, (latent_dim, hidden), dtype=jnp.float32)
        self.bias = scale * jax.random.normal(k_bias, (1, hidden), dtype=jnp.float32)
        # Offline fold: label_emb @ W_emb -> (10, hidden).
        self.fused_table = jnp.dot(self.label_emb, self.w_emb,
                                   precision=jax.lax.Precision.HIGHEST)

    def forward(self, z: jax.Array, labels: jax.Array) -> jax.Array:
        return fused_embed_first_linear(labels, z, self.fused_table, self.w_z, self.bias)


if __name__ == "__main__":
    key = jax.random.PRNGKey(0)
    k_gen, k_z, k_lbl, k_z2, k_lbl2 = jax.random.split(key, 5)

    batch = 8
    latent_dim = 32
    hidden = 128          # multiple of 128 -> lane-dense output
    img_size = 16

    gen = DemoCGANGenerator(img_size, latent_dim, hidden, k_gen)

    z = jax.random.normal(k_z, (batch, latent_dim), dtype=jnp.float32)
    labels = jax.random.randint(k_lbl, (batch,), 0, NUM_CLASSES, dtype=jnp.int32)

    # Fused embedding + first-Linear kernel (gridless path).
    out = gen.forward(z, labels)
    jax.block_until_ready(out)
    assert out.shape == (batch, hidden)
    ref = (jnp.take(gen.fused_table, labels, axis=0)
           + jnp.dot(z, gen.w_z, precision=jax.lax.Precision.HIGHEST)
           + gen.bias)
    assert jnp.allclose(out, ref, rtol=1e-2, atol=1e-2), "fused kernel mismatch (gridless)"

    # Base-class embedding-only kernel: bit-exact vs. jnp.take.
    emb = gen.embed_labels(labels)
    jax.block_until_ready(emb)
    assert emb.shape == (batch, EMB_DIM)
    assert jnp.array_equal(emb, jnp.take(gen.label_emb, labels, axis=0)), \
        "embedding kernel mismatch"

    # Gridded path with a ragged batch (B not a multiple of block_b): the last
    # block's out-of-bounds rows are masked on write by Pallas.
    big_b, block_b = 300, 128
    z_big = jax.random.normal(k_z2, (big_b, latent_dim), dtype=jnp.float32)
    labels_big = jax.random.randint(k_lbl2, (big_b,), 0, NUM_CLASSES, dtype=jnp.int32)
    out_big = fused_embed_first_linear(labels_big, z_big, gen.fused_table,
                                       gen.w_z, gen.bias, block_b=block_b)
    jax.block_until_ready(out_big)
    assert out_big.shape == (big_b, hidden)
    ref_big = (jnp.take(gen.fused_table, labels_big, axis=0)
               + jnp.dot(z_big, gen.w_z, precision=jax.lax.Precision.HIGHEST)
               + gen.bias)
    assert jnp.allclose(out_big, ref_big, rtol=1e-2, atol=1e-2), \
        "fused kernel mismatch (gridded ragged path)"

    print("KERNEL_OK")
</pallas_src>

<mosaic_0001>
module attributes {stable_mosaic.version = 11 : i64} {
  func.func @_fused_embed_linear_kernel(%arg0: memref<8x1xi32, #tpu.memory_space<vmem>>, %arg1: memref<8x32xf32, #tpu.memory_space<vmem>>, %arg2: memref<10x128xf32, #tpu.memory_space<vmem>>, %arg3: memref<32x128xf32, #tpu.memory_space<vmem>>, %arg4: memref<1x128xf32, #tpu.memory_space<vmem>>, %arg5: memref<8x128xf32, #tpu.memory_space<vmem>>) attributes {dimension_semantics = [], scalar_prefetch = 0 : i64, scratch_operands = 0 : i64, tpu.core_type = #tpu.core_type<tc>} {
    %c0 = arith.constant 0 : index
    %c0_0 = arith.constant 0 : index
    %0 = vector.load %arg0[%c0, %c0_0] : memref<8x1xi32, #tpu.memory_space<vmem>>, vector<8x1xi32>
    %c0_1 = arith.constant 0 : index
    %c0_2 = arith.constant 0 : index
    %1 = vector.load %arg1[%c0_1, %c0_2] : memref<8x32xf32, #tpu.memory_space<vmem>>, vector<8x32xf32>
    %c0_3 = arith.constant 0 : index
    %c0_4 = arith.constant 0 : index
    %2 = vector.load %arg2[%c0_3, %c0_4] : memref<10x128xf32, #tpu.memory_space<vmem>>, vector<10x128xf32>
    %cst = arith.constant 0.000000e+00 : f32
    %3 = vector.broadcast %cst : f32 to vector<8x128xf32>
    %c0_i32 = arith.constant 0 : i32
    %4 = vector.broadcast %c0_i32 : i32 to vector<8x1xi32>
    %5 = arith.cmpi eq, %0, %4 : vector<8x1xi32>
    %6 = vector.extract_strided_slice %2 {offsets = [0, 0], sizes = [1, 128], strides = [1, 1]} : vector<10x128xf32> to vector<1x128xf32>
    %7 = vector.shape_cast %5 : vector<8x1xi1> to vector<8x1xi1>
    %8 = vector.broadcast %7 : vector<8x1xi1> to vector<8x128xi1>
    %9 = vector.shape_cast %6 : vector<1x128xf32> to vector<1x128xf32>
    %10 = vector.broadcast %9 : vector<1x128xf32> to vector<8x128xf32>
    %11 = arith.select %8, %10, %3 : vector<8x128xi1>, vector<8x128xf32>
    %c1_i32 = arith.constant 1 : i32
    %12 = vector.broadcast %c1_i32 : i32 to vector<8x1xi32>
    %13 = arith.cmpi eq, %0, %12 : vector<8x1xi32>
    %14 = vector.extract_strided_slice %2 {offsets = [1, 0], sizes = [1, 128], strides = [1, 1]} : vector<10x128xf32> to vector<1x128xf32>
    %15 = vector.shape_cast %13 : vector<8x1xi1> to vector<8x1xi1>
    %16 = vector.broadcast %15 : vector<8x1xi1> to vector<8x128xi1>
    %17 = vector.shape_cast %14 : vector<1x128xf32> to vector<1x128xf32>
    %18 = vector.broadcast %17 : vector<1x128xf32> to vector<8x128xf32>
    %19 = arith.select %16, %18, %11 : vector<8x128xi1>, vector<8x128xf32>
    %c2_i32 = arith.constant 2 : i32
    %20 = vector.broadcast %c2_i32 : i32 to vector<8x1xi32>
    %21 = arith.cmpi eq, %0, %20 : vector<8x1xi32>
    %22 = vector.extract_strided_slice %2 {offsets = [2, 0], sizes = [1, 128], strides = [1, 1]} : vector<10x128xf32> to vector<1x128xf32>
    %23 = vector.shape_cast %21 : vector<8x1xi1> to vector<8x1xi1>
    %24 = vector.broadcast %23 : vector<8x1xi1> to vector<8x128xi1>
    %25 = vector.shape_cast %22 : vector<1x128xf32> to vector<1x128xf32>
    %26 = vector.broadcast %25 : vector<1x128xf32> to vector<8x128xf32>
    %27 = arith.select %24, %26, %19 : vector<8x128xi1>, vector<8x128xf32>
    %c3_i32 = arith.constant 3 : i32
    %28 = vector.broadcast %c3_i32 : i32 to vector<8x1xi32>
    %29 = arith.cmpi eq, %0, %28 : vector<8x1xi32>
    %30 = vector.extract_strided_slice %2 {offsets = [3, 0], sizes = [1, 128], strides = [1, 1]} : vector<10x128xf32> to vector<1x128xf32>
    %31 = vector.shape_cast %29 : vector<8x1xi1> to vector<8x1xi1>
    %32 = vector.broadcast %31 : vector<8x1xi1> to vector<8x128xi1>
    %33 = vector.shape_cast %30 : vector<1x128xf32> to vector<1x128xf32>
    %34 = vector.broadcast %33 : vector<1x128xf32> to vector<8x128xf32>
    %35 = arith.select %32, %34, %27 : vector<8x128xi1>, vector<8x128xf32>
    %c4_i32 = arith.constant 4 : i32
    %36 = vector.broadcast %c4_i32 : i32 to vector<8x1xi32>
    %37 = arith.cmpi eq, %0, %36 : vector<8x1xi32>
    %38 = vector.extract_strided_slice %2 {offsets = [4, 0], sizes = [1, 128], strides = [1, 1]} : vector<10x128xf32> to vector<1x128xf32>
    %39 = vector.shape_cast %37 : vector<8x1xi1> to vector<8x1xi1>
    %40 = vector.broadcast %39 : vector<8x1xi1> to vector<8x128xi1>
    %41 = vector.shape_cast %38 : vector<1x128xf32> to vector<1x128xf32>
    %42 = vector.broadcast %41 : vector<1x128xf32> to vector<8x128xf32>
    %43 = arith.select %40, %42, %35 : vector<8x128xi1>, vector<8x128xf32>
    %c5_i32 = arith.constant 5 : i32
    %44 = vector.broadcast %c5_i32 : i32 to vector<8x1xi32>
    %45 = arith.cmpi eq, %0, %44 : vector<8x1xi32>
    %46 = vector.extract_strided_slice %2 {offsets = [5, 0], sizes = [1, 128], strides = [1, 1]} : vector<10x128xf32> to vector<1x128xf32>
    %47 = vector.shape_cast %45 : vector<8x1xi1> to vector<8x1xi1>
    %48 = vector.broadcast %47 : vector<8x1xi1> to vector<8x128xi1>
    %49 = vector.shape_cast %46 : vector<1x128xf32> to vector<1x128xf32>
    %50 = vector.broadcast %49 : vector<1x128xf32> to vector<8x128xf32>
    %51 = arith.select %48, %50, %43 : vector<8x128xi1>, vector<8x128xf32>
    %c6_i32 = arith.constant 6 : i32
    %52 = vector.broadcast %c6_i32 : i32 to vector<8x1xi32>
    %53 = arith.cmpi eq, %0, %52 : vector<8x1xi32>
    %54 = vector.extract_strided_slice %2 {offsets = [6, 0], sizes = [1, 128], strides = [1, 1]} : vector<10x128xf32> to vector<1x128xf32>
    %55 = vector.shape_cast %53 : vector<8x1xi1> to vector<8x1xi1>
    %56 = vector.broadcast %55 : vector<8x1xi1> to vector<8x128xi1>
    %57 = vector.shape_cast %54 : vector<1x128xf32> to vector<1x128xf32>
    %58 = vector.broadcast %57 : vector<1x128xf32> to vector<8x128xf32>
    %59 = arith.select %56, %58, %51 : vector<8x128xi1>, vector<8x128xf32>
    %c7_i32 = arith.constant 7 : i32
    %60 = vector.broadcast %c7_i32 : i32 to vector<8x1xi32>
    %61 = arith.cmpi eq, %0, %60 : vector<8x1xi32>
    %62 = vector.extract_strided_slice %2 {offsets = [7, 0], sizes = [1, 128], strides = [1, 1]} : vector<10x128xf32> to vector<1x128xf32>
    %63 = vector.shape_cast %61 : vector<8x1xi1> to vector<8x1xi1>
    %64 = vector.broadcast %63 : vector<8x1xi1> to vector<8x128xi1>
    %65 = vector.shape_cast %62 : vector<1x128xf32> to vector<1x128xf32>
    %66 = vector.broadcast %65 : vector<1x128xf32> to vector<8x128xf32>
    %67 = arith.select %64, %66, %59 : vector<8x128xi1>, vector<8x128xf32>
    %c8_i32 = arith.constant 8 : i32
    %68 = vector.broadcast %c8_i32 : i32 to vector<8x1xi32>
    %69 = arith.cmpi eq, %0, %68 : vector<8x1xi32>
    %70 = vector.extract_strided_slice %2 {offsets = [8, 0], sizes = [1, 128], strides = [1, 1]} : vector<10x128xf32> to vector<1x128xf32>
    %71 = vector.shape_cast %69 : vector<8x1xi1> to vector<8x1xi1>
    %72 = vector.broadcast %71 : vector<8x1xi1> to vector<8x128xi1>
    %73 = vector.shape_cast %70 : vector<1x128xf32> to vector<1x128xf32>
    %74 = vector.broadcast %73 : vector<1x128xf32> to vector<8x128xf32>
    %75 = arith.select %72, %74, %67 : vector<8x128xi1>, vector<8x128xf32>
    %c9_i32 = arith.constant 9 : i32
    %76 = vector.broadcast %c9_i32 : i32 to vector<8x1xi32>
    %77 = arith.cmpi eq, %0, %76 : vector<8x1xi32>
    %78 = vector.extract_strided_slice %2 {offsets = [9, 0], sizes = [1, 128], strides = [1, 1]} : vector<10x128xf32> to vector<1x128xf32>
    %79 = vector.shape_cast %77 : vector<8x1xi1> to vector<8x1xi1>
    %80 = vector.broadcast %79 : vector<8x1xi1> to vector<8x128xi1>
    %81 = vector.shape_cast %78 : vector<1x128xf32> to vector<1x128xf32>
    %82 = vector.broadcast %81 : vector<1x128xf32> to vector<8x128xf32>
    %83 = arith.select %80, %82, %75 : vector<8x128xi1>, vector<8x128xf32>
    %c0_5 = arith.constant 0 : index
    %c0_6 = arith.constant 0 : index
    %84 = vector.load %arg3[%c0_5, %c0_6] : memref<32x128xf32, #tpu.memory_space<vmem>>, vector<32x128xf32>
    %cst_7 = arith.constant dense<0.000000e+00> : vector<8x128xf32>
    %85 = tpu.matmul %1, %84, %cst_7 {dimension_numbers = #tpu.dot_dimension_numbers<[1], [0], [0], [1], [0, 0, 1, 1], [], []>} : vector<8x32xf32>, vector<32x128xf32>, vector<8x128xf32> -> vector<8x128xf32>
    %86 = arith.addf %83, %85 : vector<8x128xf32>
    %c0_8 = arith.constant 0 : index
    %c0_9 = arith.constant 0 : index
    %87 = vector.load %arg4[%c0_8, %c0_9] : memref<1x128xf32, #tpu.memory_space<vmem>>, vector<1x128xf32>
    %88 = vector.broadcast %87 : vector<1x128xf32> to vector<8x128xf32>
    %89 = arith.addf %86, %88 : vector<8x128xf32>
    %c0_10 = arith.constant 0 : index
    %c0_11 = arith.constant 0 : index
    %90 = vector.load %arg5[%c0_10, %c0_11] : memref<8x128xf32, #tpu.memory_space<vmem>>, vector<8x128xf32>
    tpu.vector_store %arg5[%c0_10, %c0_11], %89 {strides = array<i32>} : memref<8x128xf32, #tpu.memory_space<vmem>>, vector<8x128xf32>,
    return
  }
}

</mosaic_0001>

<bundles_post_ra>
// kernel: tpu_custom_call.1
= control target key start
LH: loop header
LB: loop body
LE: loop exit
PB: predicated region body
PF: predicated region fallthrough
CT: control target
= control target key end

     0   :  { %10 = vsyncpa [#allocation3], 0  ;;  %s333_s0 = inlined_call_operand.vmem [shape: s32[8,1], index: 0, kind: input, shape index: {}]   ;;  %s334_s1 = inlined_call_operand.vmem [shape: f32[8,32], index: 1, kind: input, shape index: {}]   ;;  %s335_s2 = inlined_call_operand.hbm [shape: f32[10,128], index: 2, kind: input, shape index: {}]   ;;  %s336_s3 = inlined_call_operand.hbm [shape: f32[32,128], index: 3, kind: input, shape index: {}]   ;;  %s337_s4 = inlined_call_operand.vmem [shape: f32[1,128], index: 4, kind: input, shape index: {}]   ;;  %s338_s5 = inlined_call_operand.hbm [shape: f32[8,128], index: 5, kind: output, shape index: {}]  }
   0x1   :  { %11 = vsyncpa [#allocation6], 0 }
   0x2   :  { %12 = vsyncpa [#allocation4], 0  ;;  %s21_s20 = sshll.u32 %s335_s2, 4  ;;  %s279_s21 = smov [#allocation2]   ;;  %s22_s20 = int_to_ptr.hbm [resolvable:$true] %s21_s20 }
   0x3   :  { %s23_s22 = sshll.u32 %s279_s21, 4  ;;  %s34_s25 = sshll.u32 %s336_s3, 4  ;;  %s24_s22 = int_to_ptr.vmem [resolvable:$true] %s23_s22  ;;  %s35_s25 = int_to_ptr.hbm [resolvable:$true] %s34_s25 }
   0x4   :  { %s280_s26 = smov 128   ;;  %s281_s27 = smov 8  }
   0x5   :  { %29 = dma.hbm_to_vmem [thread:$0]  %s22_s20, 256, %s24_s22, [#allocation3], %s280_s26, %s280_s26, %s281_s27  }
   0x6   :  { %s282_s28 = smov [#allocation5]  }
   0x7   :  { %s36_s29 = sshll.u32 %s282_s28, 4  ;;  %s37_s29 = int_to_ptr.vmem [resolvable:$true] %s36_s29 }
   0x8   :  { %42 = dma.hbm_to_vmem [thread:$0]  %s35_s25, 512, %s37_s29, [#allocation6], %s280_s26, %s280_s26, %s281_s27  }
   0x9   :  { %273 = dma.done.wait [#allocation3], 256  }
   0xa   :  { %274 = vsyncadd [#allocation3], 4294967040 }
   0xb   :  { %275 = dma.done.wait [#allocation6], 512  }
   0xc   :  { %276 = vsyncadd [#allocation6], 4294966784  ;;  %v283_v0 = vmov 0   ;;  %v53_v1 = vld [vmem:[%s333_s0] sm:$0xff]  ;;  %v140_v2 = vld [vmem:[#allocation5 + $0x18] sm:$0xff]  ;;  %vm141_vm5 = vcmask 261120  }
   0xd   :  { %198 = vset.pattern.permute.xlu1 %v283_v0  ;;  %197 = vset.pattern.permute.xlu0 %v283_v0  ;;  %vm73_vm0 = vcmp.eq.s32.totalorder %v53_v1, 2  ;;  %vm57_vm1 = vcmp.eq.s32.totalorder %v53_v1, 0  ;;  %v139_v3 = vld [vmem:[#allocation5 + $0x10] sm:$0xff]  ;;  %v138_v6 = vld [vmem:[#allocation5 + $0x8] sm:$0xff]  ;;  %vm89_vm2 = vcmp.eq.s32.totalorder %v53_v1, 4  ;;  %vm81_vm3 = vcmp.eq.s32.totalorder %v53_v1, 3 }
   0xe   :  { %199 = vset.pattern.permute.xlu2 %v283_v0  ;;  %157 = vmatpush.msra.mxu0 %v140_v2  ;;  %v74_v4 = vsel %vm73_vm0, 1, %v283_v0  ;;  %v58_v5 = vsel %vm57_vm1, 1, %v283_v0  ;;  %v90_v7 = vsel %vm89_vm2, 1, %v283_v0  ;;  %vm65_vm4 = vcmp.eq.s32.totalorder %v53_v1, 1  ;;  %v137_v8 = vld [vmem:[#allocation5] sm:$0xff]  ;;  %v54_v9 = vld [vmem:[%s334_s1] sm:$0xff] }
   0xf   :  { %76 = vperm.xlu1 %198, %v74_v4   ;;  %60 = vperm.xlu0 %197, %v58_v5   ;;  %vm97_vm6 = vcmp.eq.s32.totalorder %v53_v1, 5  ;;  %v82_v10 = vsel %vm81_vm3, 1, %v283_v0  ;;  %v66_v11 = vsel %vm65_vm4, 1, %v283_v0  ;;  %vm113_vm7 = vcmp.eq.s32.totalorder %v53_v1, 7  ;;  %v55_v20 = vld [vmem:[#allocation2] sm:$0xff]  ;;  %s284_s7 = smov [#allocation7]  }
  0x10   :  { %158 = vmatpush.msra.mxu0 %v139_v3  ;;  %92 = vperm.xlu2 %199, %v90_v7   ;;  %v98_v12 = vsel %vm97_vm6, 1, %v283_v0  ;;  %vm105_vm8 = vcmp.eq.s32.totalorder %v53_v1, 6  ;;  %vm121_vm9 = vcmp.eq.s32.totalorder %v53_v1, 8  ;;  %v114_v13 = vsel %vm113_vm7, 1, %v283_v0  ;;  %v56_v40 = vld [vmem:[#allocation2 + $0x8] sm:$0x3] }
  0x11   :  { %v106_v14 = vsel %vm105_vm8, 1, %v283_v0  ;;  %v122_v15 = vsel %vm121_vm9, 1, %v283_v0  ;;  %vm129_vm10 = vcmp.eq.s32.totalorder %v53_v1, 9  ;;  %v63_v21 = vperm.slane %v55_v20, 0  ;;  %v200_v49 = vld [vmem:[%s337_s4] ss:$0 sm:$0xff] }
  0x12   :  { %159 = vmatpush.msra.mxu0 %v138_v6  ;;  %v130_v16 = vsel %vm129_vm10, 1, %v283_v0  ;;  %v71_v22 = vperm.slane %v55_v20, 1  ;;  %v79_v23 = vperm.slane %v55_v20, 2  ;;  %v87_v25 = vperm.slane %v55_v20, 3  ;;  %s177_s8 = sshll.u32 %s284_s7, 4  ;;  %s179_s11 = sshll.u32 %s338_s5, 4  ;;  %s178_s8 = int_to_ptr.vmem [resolvable:$true] %s177_s8  ;;  %s180_s11 = int_to_ptr.hbm [resolvable:$true] %s179_s11 }
  0x13   :  { %v95_v31 = vperm.slane %v55_v20, 4  ;;  %v103_v33 = vperm.slane %v55_v20, 5  ;;  %v111_v35 = vperm.slane %v55_v20, 6  ;;  %v119_v39 = vperm.slane %v55_v20, 7 }
  0x14   :  { %160 = vmatpush.msra.mxu0 %v137_v8  ;;  %v127_v43 = vperm.slane %v56_v40, 0  ;;  %v135_v45 = vperm.slane %v56_v40, 1 }
  0x15   :  { %190 = vmatmul.msk.f32.vlgmr.msra.gmra.mxu0 %vm141_vm5, %v54_v9 }
  0x17   :  { %84 = vperm.xlu1 %198, %v82_v10   ;;  %68 = vperm.xlu0 %197, %v66_v11  }
  0x18   :  { %100 = vperm.xlu2 %199, %v98_v12  }
  0x1f   :  { %116 = vperm.xlu1 %198, %v114_v13   ;;  %108 = vperm.xlu0 %197, %v106_v14  }
  0x20   :  { %124 = vperm.xlu2 %199, %v122_v15  }
  0x27   :  { %132 = vperm.xlu0 %197, %v130_v16  }
  0x6a   :  { %v93_v19 = vpop.permute.xlu2 %92 }
  0x6b   :  { %vm94_vm15 = vcmp.eq.s32.totalorder %v93_v19, 1 }
  0x72   :  { %v101_v29 = vpop.permute.xlu2 %100 }
  0x73   :  { %vm102_vm0 = vcmp.eq.s32.totalorder %v101_v29, 1 }
  0x7a   :  { %v125_v42 = vpop.permute.xlu2 %124 }
  0x7b   :  { %vm126_vm3 = vcmp.eq.s32.totalorder %v125_v42, 1 }
  0x81   :  { %v77_v17 = vpop.permute.xlu1 %76  ;;  %v61_v18 = vpop.permute.xlu0 %60 }
  0x82   :  { %vm62_vm11 = vcmp.eq.s32.totalorder %v61_v18, 1  ;;  %vm78_vm13 = vcmp.eq.s32.totalorder %v77_v17, 1 }
  0x83   :  { %v64_v27 = vsel %vm62_vm11, %v63_v21, 0.0 }
  0x89   :  { %v85_v24 = vpop.permute.xlu1 %84  ;;  %v69_v26 = vpop.permute.xlu0 %68 }
  0x8a   :  { %vm70_vm12 = vcmp.eq.s32.totalorder %v69_v26, 1  ;;  %vm86_vm14 = vcmp.eq.s32.totalorder %v85_v24, 1 }
  0x8b   :  { %v72_v28 = vsel %vm70_vm12, %v71_v22, %v64_v27 }
  0x8c   :  { %v80_v30 = vsel %vm78_vm13, %v79_v23, %v72_v28 }
  0x8d   :  { %v88_v32 = vsel %vm86_vm14, %v87_v25, %v80_v30 }
  0x8e   :  { %v96_v34 = vsel %vm94_vm15, %v95_v31, %v88_v32 }
  0x8f   :  { %v104_v38 = vsel %vm102_vm0, %v103_v33, %v96_v34 }
  0x91   :  { %v117_v36 = vpop.permute.xlu1 %116  ;;  %v109_v37 = vpop.permute.xlu0 %108 }
  0x92   :  { %vm110_vm1 = vcmp.eq.s32.totalorder %v109_v37, 1  ;;  %vm118_vm2 = vcmp.eq.s32.totalorder %v117_v36, 1  ;;  %v162_v47 = vpop.f32.mrf.mxu0 }
  0x93   :  { %v112_v41 = vsel %vm110_vm1, %v111_v35, %v104_v38 }
  0x94   :  { %v120_v44 = vsel %vm118_vm2, %v119_v39, %v112_v41 }
  0x95   :  { %v128_v48 = vsel %vm126_vm3, %v127_v43, %v120_v44 }
  0x99   :  { %v133_v46 = vpop.permute.xlu0 %132 }
  0x9a   :  { %vm134_vm4 = vcmp.eq.s32.totalorder %v133_v46, 1 }
  0x9b   :  { %v136_v50 = vsel %vm134_vm4, %v135_v45, %v128_v48 }
  0x9c   :  { %v165_v51 = vadd.f32 %v162_v47, %v136_v50 }
  0x9e   :  { %v170_v52 = vadd.f32 %v200_v49, %v165_v51 }
  0xa0   :  { %171 = vst [vmem:[#allocation7] sm:$0xff] %v170_v52 }
  0xa1   :  { %182 = dma.vmem_to_hbm [thread:$0]  %s178_s8, 128, %s180_s11, [#allocation4]  }
  0xa2   :  { %277 = dma.done.wait [#allocation4], 128  }
  0xa3   :  { %278 = vsyncadd [#allocation4], 4294967168 }
  0xa4   :  { %187 = vsyncpa [#allocation3], 1 }
  0xa5   :  { %188 = vsyncpa [#allocation6], 1 }
  0xa6   :  { %189 = vsyncpa [#allocation4], 1 }

</bundles_post_ra>
